<compile_context>
chip_gen: v5e
topology: v5e:2x2
jax: 0.10.0
libtpu: 0.0.40
codegen_flags: <defaults>
</compile_context>

<pallas_src>
import functools

import jax
import jax.numpy as jnp
from jax.experimental import pallas as pl
from jax.experimental.pallas import tpu as pltpu

_LANE = 128
_SUB = 8
_MAX_BLOCK_ROWS = 4096  # (4096,128) f32 tile = 2 MiB / input / pipeline buffer


def _sublane_multiple(dtype):
    # Minimum second-minor multiple for a non-full-dim block of this dtype.
    itemsize = jnp.dtype(dtype).itemsize
    return {4: 8, 2: 16, 1: 32}.get(itemsize, 8)


def _dice_bce_partials_kernel(x_ref, t_ref, out_ref, *, block_rows,
                              tiles_per_slot, rows_valid, need_mask):
    j = pl.program_id(1)

    @pl.when(j == 0)
    def _():
        out_ref[...] = jnp.zeros_like(out_ref)

    x = x_ref[...].astype(jnp.float32)   # logits tile   (block_rows, 128)
    t = t_ref[...].astype(jnp.float32)   # targets tile  (block_rows, 128)

    if need_mask:
        # Ragged last tile / redundant slot tile: rows at or beyond rows_valid
        # contain garbage (OOB read) -> force them to contribute ~0.
        s = pl.program_id(0)
        tile_idx = s * tiles_per_slot + j
        n_live = rows_valid - tile_idx * block_rows      # may be <=0 or >block_rows
        row_id = jax.lax.broadcasted_iota(jnp.int32, x.shape, 0)
        live = row_id < n_live
        x = jnp.where(live, x, -100.0)                   # sigmoid ~ 0, BCE ~ 0
        t = jnp.where(live, t, 0.0)

    # Shared transcendental: e = exp(-|x|) gives both sigmoid and the stable
    # BCE-from-logits tail.
    e = jnp.exp(-jnp.abs(x))
    inv = pl.reciprocal(1.0 + e)                         # exact reciprocal
    p = jnp.where(x >= 0.0, inv, e * inv)                # sigmoid(x)

    # -(t*log(p) + (1-t)*log(1-p)) == max(x,0) - x*t + log1p(exp(-|x|))
    bce = jnp.maximum(x, 0.0) - x * t + jnp.log1p(e)

    # Whole-vreg accumulation: fold the tile over 8-row groups with pure VALU
    # adds; defer every cross-sublane / cross-lane reduction to the wrapper.
    nb = block_rows // _SUB

    def fold(v):
        return jnp.sum(v.reshape(nb, _SUB, _LANE), axis=0)

    out_ref[0, 0] += fold(p * t)    # intersection
    out_ref[0, 1] += fold(p)        # sum_p
    out_ref[0, 2] += fold(t)        # sum_t
    out_ref[0, 3] += fold(bce)      # bce_sum


def dice_bce_loss(inputs, targets, smooth=1.0):
    """Matches PyTorch DiceBCELoss.forward(inputs=logits, targets)."""
    n = int(inputs.size)
    x = inputs.reshape(-1)
    t = targets.reshape(-1)

    sub = max(_sublane_multiple(x.dtype), _sublane_multiple(t.dtype))
    rows = pl.cdiv(n, _LANE)
    rows_pad = pl.cdiv(rows, sub) * sub
    n_pad = rows_pad * _LANE
    if n_pad != n:
        # Only taken when the flat size is not already a multiple of 128*sub.
        # Padded logits of -100 -> sigmoid ~ 0 and BCE term ~ 0, so padding
        # adds nothing to any sum.
        # TODO(synk): a fully copy-free ragged tail would need an element-level
        # mask on an un-reshaped 1-D view; accepted as a small one-off copy.
        x = jnp.pad(x, (0, n_pad - n), constant_values=-100.0)
        t = jnp.pad(t, (0, n_pad - n), constant_values=0)
    x2 = x.reshape(rows_pad, _LANE)
    t2 = t.reshape(rows_pad, _LANE)

    # rows_pad is a multiple of `sub` (>=8); block_rows is either the full row
    # count (exempt from the divisibility rule) or _MAX_BLOCK_ROWS (mult of 32).
    block_rows = min(_MAX_BLOCK_ROWS, rows_pad)
    total_tiles = pl.cdiv(rows_pad, block_rows)
    nslots = 2 if total_tiles >= 2 else 1      # megacore split (loop on 1-TC chips)
    tps = pl.cdiv(total_tiles, nslots)
    need_mask = (rows_pad % block_rows != 0) or (total_tiles % nslots != 0)

    if total_tiles % nslots == 0:
        in_idx = lambda s, j: (s * tps + j, 0)
    else:
        # Clamp so the DMA never starts fully out of bounds; the redundant tile
        # is zeroed out by the in-kernel mask (its unclamped index is used).
        last = total_tiles - 1
        in_idx = lambda s, j: (jnp.minimum(s * tps + j, last), 0)

    kernel = functools.partial(
        _dice_bce_partials_kernel,
        block_rows=block_rows,
        tiles_per_slot=tps,
        rows_valid=rows_pad,
        need_mask=need_mask,
    )

    partials = pl.pallas_call(
        kernel,
        out_shape=jax.ShapeDtypeStruct((nslots, 4, _SUB, _LANE), jnp.float32),
        grid_spec=pltpu.PrefetchScalarGridSpec(
            num_scalar_prefetch=0,
            grid=(nslots, tps),
            in_specs=[
                pl.BlockSpec((block_rows, _LANE), in_idx),
                pl.BlockSpec((block_rows, _LANE), in_idx),
            ],
            out_specs=pl.BlockSpec((1, 4, _SUB, _LANE),
                                   lambda s, j: (s, 0, 0, 0)),
        ),
        compiler_params=pltpu.CompilerParams(
            dimension_semantics=("parallel", "arbitrary"),
            vmem_limit_bytes=32 * 1024 * 1024,
        ),
    )(x2, t2)

    # Tiny final combine in plain JAX (per perf review).
    sums = jnp.sum(partials, axis=(0, 2, 3))             # (4,)
    inter, sum_p, sum_t, bce_sum = sums[0], sums[1], sums[2], sums[3]
    smooth = jnp.float32(smooth)
    dice_loss = 1.0 - (2.0 * inter + smooth) / (sum_p + sum_t + smooth)
    return bce_sum / jnp.float32(n) + dice_loss


if __name__ == "__main__":
    key = jax.random.PRNGKey(0)
    k_in, k_tg = jax.random.split(key)

    # Small shapes consistent with a segmentation head: NCHW logits + binary mask.
    B, C, H, W = 2, 4, 16, 16
    inputs = jax.random.normal(k_in, (B, C, H, W), dtype=jnp.float32)
    targets = jax.random.bernoulli(k_tg, p=0.3, shape=(B, C, H, W)).astype(jnp.float32)

    loss = dice_bce_loss(inputs, targets, smooth=1.0)
    jax.block_until_ready(loss)

    # Sanity check against a pure-JAX reference of the PyTorch math.
    p = jax.nn.sigmoid(inputs).reshape(-1)
    tt = targets.reshape(-1)
    inter = jnp.sum(p * tt)
    dice = 1.0 - (2.0 * inter + 1.0) / (jnp.sum(p) + jnp.sum(tt) + 1.0)
    bce = jnp.mean(-(tt * jnp.log(p) + (1.0 - tt) * jnp.log(1.0 - p)))
    ref = bce + dice
    assert jnp.allclose(loss, ref, atol=1e-5, rtol=1e-5), (loss, ref)

    print("KERNEL_OK")
</pallas_src>

<mosaic_0001>
module attributes {stable_mosaic.version = 11 : i64} {
  func.func @_dice_bce_partials_kernel(%arg0: i32, %arg1: i32, %arg2: memref<16x128xf32, #tpu.memory_space<vmem>>, %arg3: memref<16x128xf32, #tpu.memory_space<vmem>>, %arg4: memref<1x4x8x128xf32, #tpu.memory_space<vmem>>) attributes {dimension_semantics = [#tpu.dimension_semantics<parallel>, #tpu.dimension_semantics<arbitrary>], iteration_bounds = array<i64: 1, 1>, scalar_prefetch = 0 : i64, scratch_operands = 0 : i64, tpu.core_type = #tpu.core_type<tc>, window_params = [{transform_indices = @transform_0, window_bounds = array<i64: 16, 128>}, {transform_indices = @transform_1, window_bounds = array<i64: 16, 128>}, {transform_indices = @transform_2, window_bounds = array<i64: 1, 4, 8, 128>}]} {
    %c0_i32 = arith.constant 0 : i32
    %0 = arith.cmpi eq, %arg1, %c0_i32 : i32
    %1 = arith.extui %0 : i1 to i32
    %c0_i32_0 = arith.constant 0 : i32
    %2 = arith.cmpi ne, %1, %c0_i32_0 : i32
    scf.if %2 {
      %cst_40 = arith.constant 0.000000e+00 : f32
      %55 = vector.broadcast %cst_40 : f32 to vector<1x4x8x128xf32>
      %c0_41 = arith.constant 0 : index
      %c0_42 = arith.constant 0 : index
      %c0_43 = arith.constant 0 : index
      %c0_44 = arith.constant 0 : index
      %56 = vector.load %arg4[%c0_41, %c0_42, %c0_43, %c0_44] : memref<1x4x8x128xf32, #tpu.memory_space<vmem>>, vector<1x4x8x128xf32>
      tpu.vector_store %arg4[%c0_41, %c0_42, %c0_43, %c0_44], %55 {strides = array<i32>} : memref<1x4x8x128xf32, #tpu.memory_space<vmem>>, vector<1x4x8x128xf32>,
    } else {
    }
    %c0 = arith.constant 0 : index
    %c0_1 = arith.constant 0 : index
    %3 = vector.load %arg2[%c0, %c0_1] : memref<16x128xf32, #tpu.memory_space<vmem>>, vector<16x128xf32>
    %c0_2 = arith.constant 0 : index
    %c0_3 = arith.constant 0 : index
    %4 = vector.load %arg3[%c0_2, %c0_3] : memref<16x128xf32, #tpu.memory_space<vmem>>, vector<16x128xf32>
    %5 = math.absf %3 : vector<16x128xf32>
    %cst = arith.constant 0.000000e+00 : f32
    %6 = vector.broadcast %cst : f32 to vector<16x128xf32>
    %7 = arith.subf %6, %5 : vector<16x128xf32>
    %8 = math.exp %7 : vector<16x128xf32>
    %cst_4 = arith.constant 1.000000e+00 : f32
    %9 = vector.broadcast %cst_4 : f32 to vector<16x128xf32>
    %10 = arith.addf %9, %8 : vector<16x128xf32>
    %11 = tpu.reciprocal %10 : vector<16x128xf32> -> vector<16x128xf32>
    %cst_5 = arith.constant 0.000000e+00 : f32
    %12 = vector.broadcast %cst_5 : f32 to vector<16x128xf32>
    %13 = arith.cmpf oge, %3, %12 : vector<16x128xf32>
    %14 = arith.mulf %8, %11 : vector<16x128xf32>
    %15 = arith.select %13, %11, %14 : vector<16x128xi1>, vector<16x128xf32>
    %cst_6 = arith.constant 0.000000e+00 : f32
    %16 = vector.broadcast %cst_6 : f32 to vector<16x128xf32>
    %17 = arith.maximumf %3, %16 : vector<16x128xf32>
    %18 = arith.mulf %3, %4 : vector<16x128xf32>
    %19 = arith.subf %17, %18 : vector<16x128xf32>
    %20 = math.log1p %8 : vector<16x128xf32>
    %21 = arith.addf %19, %20 : vector<16x128xf32>
    %c0_7 = arith.constant 0 : index
    %c0_8 = arith.constant 0 : index
    %c0_9 = arith.constant 0 : index
    %c0_10 = arith.constant 0 : index
    %22 = vector.load %arg4[%c0_7, %c0_8, %c0_9, %c0_10] : memref<1x4x8x128xf32, #tpu.memory_space<vmem>>, vector<1x1x8x128xf32>
    %23 = vector.shape_cast %22 : vector<1x1x8x128xf32> to vector<8x128xf32>
    %24 = arith.mulf %15, %4 : vector<16x128xf32>
    %25 = vector.shape_cast %24 : vector<16x128xf32> to vector<2x8x128xf32>
    %cst_11 = arith.constant dense<0.000000e+00> : vector<8x128xf32>
    %26 = vector.multi_reduction <add>, %25, %cst_11 [0] : vector<2x8x128xf32> to vector<8x128xf32>
    %27 = arith.addf %23, %26 : vector<8x128xf32>
    %c0_12 = arith.constant 0 : index
    %c0_13 = arith.constant 0 : index
    %c0_14 = arith.constant 0 : index
    %c0_15 = arith.constant 0 : index
    %28 = vector.load %arg4[%c0_12, %c0_13, %c0_14, %c0_15] : memref<1x4x8x128xf32, #tpu.memory_space<vmem>>, vector<1x1x8x128xf32>
    %29 = vector.shape_cast %28 : vector<1x1x8x128xf32> to vector<8x128xf32>
    %30 = vector.shape_cast %27 : vector<8x128xf32> to vector<1x1x8x128xf32>
    tpu.vector_store %arg4[%c0_12, %c0_13, %c0_14, %c0_15], %30 {strides = array<i32>} : memref<1x4x8x128xf32, #tpu.memory_space<vmem>>, vector<1x1x8x128xf32>,
    %c0_16 = arith.constant 0 : index
    %c1 = arith.constant 1 : index
    %c0_17 = arith.constant 0 : index
    %c0_18 = arith.constant 0 : index
    %31 = vector.load %arg4[%c0_16, %c1, %c0_17, %c0_18] : memref<1x4x8x128xf32, #tpu.memory_space<vmem>>, vector<1x1x8x128xf32>
    %32 = vector.shape_cast %31 : vector<1x1x8x128xf32> to vector<8x128xf32>
    %33 = vector.shape_cast %15 : vector<16x128xf32> to vector<2x8x128xf32>
    %cst_19 = arith.constant dense<0.000000e+00> : vector<8x128xf32>
    %34 = vector.multi_reduction <add>, %33, %cst_19 [0] : vector<2x8x128xf32> to vector<8x128xf32>
    %35 = arith.addf %32, %34 : vector<8x128xf32>
    %c0_20 = arith.constant 0 : index
    %c1_21 = arith.constant 1 : index
    %c0_22 = arith.constant 0 : index
    %c0_23 = arith.constant 0 : index
    %36 = vector.load %arg4[%c0_20, %c1_21, %c0_22, %c0_23] : memref<1x4x8x128xf32, #tpu.memory_space<vmem>>, vector<1x1x8x128xf32>
    %37 = vector.shape_cast %36 : vector<1x1x8x128xf32> to vector<8x128xf32>
    %38 = vector.shape_cast %35 : vector<8x128xf32> to vector<1x1x8x128xf32>
    tpu.vector_store %arg4[%c0_20, %c1_21, %c0_22, %c0_23], %38 {strides = array<i32>} : memref<1x4x8x128xf32, #tpu.memory_space<vmem>>, vector<1x1x8x128xf32>,
    %c0_24 = arith.constant 0 : index
    %c2 = arith.constant 2 : index
    %c0_25 = arith.constant 0 : index
    %c0_26 = arith.constant 0 : index
    %39 = vector.load %arg4[%c0_24, %c2, %c0_25, %c0_26] : memref<1x4x8x128xf32, #tpu.memory_space<vmem>>, vector<1x1x8x128xf32>
    %40 = vector.shape_cast %39 : vector<1x1x8x128xf32> to vector<8x128xf32>
    %41 = vector.shape_cast %4 : vector<16x128xf32> to vector<2x8x128xf32>
    %cst_27 = arith.constant dense<0.000000e+00> : vector<8x128xf32>
    %42 = vector.multi_reduction <add>, %41, %cst_27 [0] : vector<2x8x128xf32> to vector<8x128xf32>
    %43 = arith.addf %40, %42 : vector<8x128xf32>
    %c0_28 = arith.constant 0 : index
    %c2_29 = arith.constant 2 : index
    %c0_30 = arith.constant 0 : index
    %c0_31 = arith.constant 0 : index
    %44 = vector.load %arg4[%c0_28, %c2_29, %c0_30, %c0_31] : memref<1x4x8x128xf32, #tpu.memory_space<vmem>>, vector<1x1x8x128xf32>
    %45 = vector.shape_cast %44 : vector<1x1x8x128xf32> to vector<8x128xf32>
    %46 = vector.shape_cast %43 : vector<8x128xf32> to vector<1x1x8x128xf32>
    tpu.vector_store %arg4[%c0_28, %c2_29, %c0_30, %c0_31], %46 {strides = array<i32>} : memref<1x4x8x128xf32, #tpu.memory_space<vmem>>, vector<1x1x8x128xf32>,
    %c0_32 = arith.constant 0 : index
    %c3 = arith.constant 3 : index
    %c0_33 = arith.constant 0 : index
    %c0_34 = arith.constant 0 : index
    %47 = vector.load %arg4[%c0_32, %c3, %c0_33, %c0_34] : memref<1x4x8x128xf32, #tpu.memory_space<vmem>>, vector<1x1x8x128xf32>
    %48 = vector.shape_cast %47 : vector<1x1x8x128xf32> to vector<8x128xf32>
    %49 = vector.shape_cast %21 : vector<16x128xf32> to vector<2x8x128xf32>
    %cst_35 = arith.constant dense<0.000000e+00> : vector<8x128xf32>
    %50 = vector.multi_reduction <add>, %49, %cst_35 [0] : vector<2x8x128xf32> to vector<8x128xf32>
    %51 = arith.addf %48, %50 : vector<8x128xf32>
    %c0_36 = arith.constant 0 : index
    %c3_37 = arith.constant 3 : index
    %c0_38 = arith.constant 0 : index
    %c0_39 = arith.constant 0 : index
    %52 = vector.load %arg4[%c0_36, %c3_37, %c0_38, %c0_39] : memref<1x4x8x128xf32, #tpu.memory_space<vmem>>, vector<1x1x8x128xf32>
    %53 = vector.shape_cast %52 : vector<1x1x8x128xf32> to vector<8x128xf32>
    %54 = vector.shape_cast %51 : vector<8x128xf32> to vector<1x1x8x128xf32>
    tpu.vector_store %arg4[%c0_36, %c3_37, %c0_38, %c0_39], %54 {strides = array<i32>} : memref<1x4x8x128xf32, #tpu.memory_space<vmem>>, vector<1x1x8x128xf32>,
    return
  }
  func.func @transform_0(%arg0: i32, %arg1: i32) -> (i32, i32) {
    %c1_i32 = arith.constant 1 : i32
    %0 = arith.muli %arg0, %c1_i32 : i32
    %1 = arith.addi %0, %arg1 : i32
    %c0_i32 = arith.constant 0 : i32
    %c0_i32_0 = arith.constant 0 : i32
    return %1, %c0_i32 : i32, i32
  }
  func.func @transform_1(%arg0: i32, %arg1: i32) -> (i32, i32) {
    %c1_i32 = arith.constant 1 : i32
    %0 = arith.muli %arg0, %c1_i32 : i32
    %1 = arith.addi %0, %arg1 : i32
    %c0_i32 = arith.constant 0 : i32
    %c0_i32_0 = arith.constant 0 : i32
    return %1, %c0_i32 : i32, i32
  }
  func.func @transform_2(%arg0: i32, %arg1: i32) -> (i32, i32, i32, i32) {
    %c0_i32 = arith.constant 0 : i32
    %c0_i32_0 = arith.constant 0 : i32
    %c0_i32_1 = arith.constant 0 : i32
    %c0_i32_2 = arith.constant 0 : i32
    return %arg0, %c0_i32, %c0_i32_0, %c0_i32_1 : i32, i32, i32, i32
  }
}

</mosaic_0001>

<bundles_post_ra>
// kernel: tpu_custom_call.1
= control target key start
LH: loop header
LB: loop body
LE: loop exit
PB: predicated region body
PF: predicated region fallthrough
CT: control target
= control target key end

     0   :  { %7 = vsyncpa [#allocation3], 0  ;;  %s363_s0 = inlined_call_operand.hbm [shape: f32[16,128], index: 0, kind: input, shape index: {}]   ;;  %s364_s1 = inlined_call_operand.hbm [shape: f32[16,128], index: 1, kind: input, shape index: {}]   ;;  %s365_s2 = inlined_call_operand.hbm [shape: f32[1,4,8,128], index: 2, kind: output, shape index: {}]  }
   0x1   :  { %8 = vsyncpa [#allocation6], 0 }
   0x2   :  { %9 = vsyncpa [#allocation4], 0  ;;  %s18_s11 = sshll.u32 %s363_s0, 4  ;;  %s275_s12 = smov [#allocation2]   ;;  %s19_s11 = int_to_ptr.hbm [resolvable:$true] %s18_s11 }
   0x3   :  { %s20_s13 = sshll.u32 %s275_s12, 4  ;;  %s35_s16 = sshll.u32 %s364_s1, 4  ;;  %s21_s13 = int_to_ptr.vmem [resolvable:$true] %s20_s13  ;;  %s36_s16 = int_to_ptr.hbm [resolvable:$true] %s35_s16 }
   0x4   :  { %s276_s17 = smov 128   ;;  %s277_s18 = smov 8  }
   0x5   :  { %26 = dma.hbm_to_vmem [thread:$0]  %s19_s11, 256, %s21_s13, [#allocation3], %s276_s17, %s276_s17, %s277_s18  }
   0x6   :  { %s278_s19 = smov [#allocation5]  }
   0x7   :  { %s37_s20 = sshll.u32 %s278_s19, 4  ;;  %s38_s20 = int_to_ptr.vmem [resolvable:$true] %s37_s20 }
   0x8   :  { %43 = dma.hbm_to_vmem [thread:$0]  %s36_s16, 256, %s38_s20, [#allocation6], %s276_s17, %s276_s17, %s277_s18  }
   0x9   :  { %269 = dma.done.wait [#allocation3], 256  }
   0xa   :  { %270 = vsyncadd [#allocation3], 4294967040 }
   0xb   :  { %271 = dma.done.wait [#allocation6], 256  }
   0xc   :  { %272 = vsyncadd [#allocation6], 4294967040  ;;  %v307_v0 = vld [vmem:[#allocation2] sm:$0xff]  ;;  %v309_v1 = vld [vmem:[#allocation2 + $0x8] sm:$0xff]  ;;  %s279_s0 = smov [#allocation7]   ;;  %s165_s23 = sshll.u32 %s365_s2, 4  ;;  %s166_s23 = int_to_ptr.hbm [resolvable:$true] %s165_s23 }
   0xd   :  { %v68_v2 = vand.u32 2147483647, %v307_v0  ;;  %v69_v3 = vand.u32 2147483647, %v309_v1  ;;  %v313_v8 = vld [vmem:[#allocation5] sm:$0xff]  ;;  %v315_v9 = vld [vmem:[#allocation5 + $0x8] sm:$0xff] }
   0xe   :  { %v151_v10 = vadd.f32 %v315_v9, %v313_v8  ;;  %v114_v17 = vmul.f32 %v313_v8, %v307_v0  ;;  %v112_v18 = vmax.f32 %v307_v0, 0.0  ;;  %v113_v19 = vmax.f32 %v309_v1, 0.0  ;;  %s163_s1 = sshll.u32 %s279_s0, 4  ;;  %s164_s1 = int_to_ptr.vmem [resolvable:$true] %s163_s1 }
   0xf   :  { %v70_v4 = vsub.f32 0.0, %v68_v2  ;;  %v71_v5 = vsub.f32 0.0, %v69_v3  ;;  %v115_v20 = vmul.f32 %v315_v9, %v309_v1  ;;  %vm106_vm10 = vcmp.ge.f32.partialorder %v307_v0, 0.0 }
  0x10   :  { %153 = vst [vmem:[#allocation7 + $0x10] sm:$0xff] %v151_v10  ;;  %v116_v27 = vsub.f32 %v112_v18, %v114_v17  ;;  %vm107_vm11 = vcmp.ge.f32.partialorder %v309_v1, 0.0 }
  0x11   :  { %v72_v6 = vmul.f32 1.442695, %v70_v4  ;;  %v74_v7 = vmul.f32 1.442695, %v71_v5  ;;  %v117_v28 = vsub.f32 %v113_v19, %v115_v20 }
  0x13   :  { %185 = vpow2.f32 %v72_v6 }
  0x14   :  { %187 = vpow2.f32 %v74_v7 }
  0x19   :  { %v319_v11 = vpop.eup %185 }
  0x1a   :  { %v321_v12 = vpop.eup %187  ;;  %v76_v13 = vadd.f32 1.0, %v319_v11  ;;  %v121_v15 = vmul.f32 -0.5, %v319_v11  ;;  %v124_v22 = vand.u32 2147483647, %v319_v11 }
  0x1b   :  { %v77_v14 = vadd.f32 1.0, %v321_v12  ;;  %v130_v16 = vmul.f32 -0.5, %v321_v12  ;;  %v133_v24 = vand.u32 2147483647, %v321_v12 }
  0x1c   :  { %189 = vrcp.f32 %v76_v13  ;;  %v122_v21 = vadd.f32 1.0, %v121_v15  ;;  %vm83_vm0 = vweird.f32 %v76_v13  ;;  %v87_v26 = vand.u32 2147483647, %v76_v13 }
  0x1d   :  { %191 = vrcp.f32 %v77_v14  ;;  %v131_v23 = vadd.f32 1.0, %v130_v16  ;;  %v89_v31 = vand.u32 2147483648, %v76_v13  ;;  %vm97_vm1 = vweird.f32 %v77_v14 }
  0x1e   :  { %193 = vlog2.f32 %v76_v13  ;;  %v123_v32 = vmul.f32 %v319_v11, %v122_v21  ;;  %v103_v35 = vand.u32 2147483648, %v77_v14  ;;  %vm336_vm2 = vcmp.lt.f32.partialorder %v124_v22, 0.0004427343 }
  0x1f   :  { %195 = vlog2.f32 %v77_v14  ;;  %v132_v37 = vmul.f32 %v321_v12, %v131_v23  ;;  %vm341_vm4 = vcmp.lt.f32.partialorder %v133_v24, 0.0004427343  ;;  %v101_v43 = vand.u32 2147483647, %v77_v14 }
  0x20   :  { %v90_v47 = vor.u32 1.1754944e-38, %v89_v31  ;;  %vm88_vm7 = vcmp.eq.f32.partialorder %v87_v26, 8.507059e+37  ;;  %v104_v52 = vor.u32 1.1754944e-38, %v103_v35 }
  0x21   :  { %vm102_vm9 = vcmp.eq.f32.partialorder %v101_v43, 8.507059e+37 }
  0x22   :  { %v190_v25 = vpop.eup %189 }
  0x23   :  { %v192_v29 = vpop.eup %191  ;;  %v79_v30 = vmul.f32 %v190_v25, %v76_v13  ;;  %vm84_vm3 = vweird.f32 %v190_v25 }
  0x24   :  { %v194_v33 = vpop.eup %193  ;;  %v93_v34 = vmul.f32 %v192_v29, %v77_v14  ;;  %vm98_vm5 = vweird.f32 %v192_v29  ;;  %vm85_vm6 = vmor %vm83_vm0, %vm84_vm3 }
  0x25   :  { %v196_v38 = vpop.eup %195  ;;  %v80_v39 = vsub.f32 1.0, %v79_v30  ;;  %v120_v40 = vmul.f32 0.6931472, %v194_v33  ;;  %vm99_vm8 = vmor %vm97_vm1, %vm98_vm5 }
  0x26   :  { %v94_v42 = vsub.f32 1.0, %v93_v34  ;;  %v129_v44 = vmul.f32 0.6931472, %v196_v38 }
  0x27   :  { %v81_v45 = vmul.f32 %v190_v25, %v80_v39  ;;  %v126_v46 = vsel %vm336_vm2, %v123_v32, %v120_v40 }
  0x28   :  { %v95_v48 = vmul.f32 %v192_v29, %v94_v42  ;;  %v135_v49 = vsel %vm341_vm4, %v132_v37, %v129_v44  ;;  %v136_v50 = vadd.f32 %v126_v46, %v116_v27 }
  0x29   :  { %v82_v51 = vadd.f32 %v190_v25, %v81_v45  ;;  %v137_v53 = vadd.f32 %v135_v49, %v117_v28 }
  0x2a   :  { %v96_v54 = vadd.f32 %v192_v29, %v95_v48 }
  0x2b   :  { %v86_v55 = vsel %vm85_vm6, %v190_v25, %v82_v51  ;;  %v156_v56 = vadd.f32 %v137_v53, %v136_v50 }
  0x2c   :  { %v91_v57 = vsel %vm88_vm7, %v90_v47, %v86_v55  ;;  %v100_v58 = vsel %vm99_vm8, %v192_v29, %v96_v54 }
  0x2d   :  { %v105_v59 = vsel %vm102_vm9, %v104_v52, %v100_v58  ;;  %v108_v60 = vmul.f32 %v319_v11, %v91_v57  ;;  %158 = vst [vmem:[#allocation7 + $0x18] sm:$0xff] %v156_v56 }
  0x2e   :  { %v109_v61 = vmul.f32 %v321_v12, %v105_v59 }
  0x2f   :  { %v110_v62 = vsel %vm106_vm10, %v91_v57, %v108_v60 }
  0x30   :  { %v111_v63 = vsel %vm107_vm11, %v105_v59, %v109_v61  ;;  %v139_v2 = vmul.f32 %v110_v62, %v313_v8 }
  0x31   :  { %v140_v3 = vmul.f32 %v111_v63, %v315_v9  ;;  %v146_v4 = vadd.f32 %v111_v63, %v110_v62 }
  0x33   :  { %v141_v0 = vadd.f32 %v140_v3, %v139_v2  ;;  %148 = vst [vmem:[#allocation7 + $0x8] sm:$0xff] %v146_v4 }
  0x35   :  { %143 = vst [vmem:[#allocation7] sm:$0xff] %v141_v0 }
  0x36   :  { %171 = dma.vmem_to_hbm [thread:$0]  %s164_s1, 512, %s166_s23, [#allocation4], %s276_s17, %s276_s17, %s277_s18  }
  0x37   :  { %273 = dma.done.wait [#allocation4], 512  }
  0x38   :  { %274 = vsyncadd [#allocation4], 4294966784 }
  0x39   :  { %176 = vsyncpa [#allocation3], 1 }
  0x3a   :  { %177 = vsyncpa [#allocation6], 1 }
  0x3b   :  { %178 = vsyncpa [#allocation4], 1 }

</bundles_post_ra>
